<compile_context>
chip_gen: v6e
topology: v6e:2x2x1
jax: 0.10.0
libtpu: 0.0.40
codegen_flags: <defaults>
</compile_context>

<pallas_src>
import functools

import numpy as np
import jax
import jax.numpy as jnp
from jax import lax
from jax.experimental import pallas as pl
from jax.experimental.pallas import tpu as pltpu


def _lax_reference(x_nchw, w_dw, b_dw, w_pw, b_pw, *, stride=1, padding=1):
    """Pure-JAX reference (lax conv), NCHW semantics identical to PyTorch."""
    Cin = x_nchw.shape[1]
    dw = lax.conv_general_dilated(
        x_nchw, w_dw, window_strides=(stride, stride),
        padding=[(padding, padding), (padding, padding)],
        dimension_numbers=("NCHW", "OIHW", "NCHW"),
        feature_group_count=Cin)
    dw = dw + b_dw.reshape(1, -1, 1, 1)
    pw = lax.conv_general_dilated(
        dw, w_pw, window_strides=(1, 1), padding=[(0, 0), (0, 0)],
        dimension_numbers=("NCHW", "OIHW", "NCHW"))
    return pw + b_pw.reshape(1, -1, 1, 1)


def _vmem_budget_bytes():
    """Generation-aware usable-VMEM budget (physical minus headroom)."""
    try:
        kind = jax.devices()[0].device_kind.lower()
    except Exception:
        kind = ""
    if "v2" in kind or "v3" in kind:
        return 12 * 1024 * 1024
    if "v4" in kind or "v5" in kind or "v6" in kind:
        return 100 * 1024 * 1024          # 128 MiB physical
    return 48 * 1024 * 1024               # v7x-class: 64 MiB physical


def _choose_tiles(N, Ho, fits):
    """Pick (nb, th): batches folded per step and output rows per slab.

    Preference order: fits VMEM; >= 2 grid steps (keeps both v7x TCs busy, negligible
    cost on v5e/v6e); larger MXU M = nb*th (capped at 256 MXU rows); larger th.
    """
    th_cands = [d for d in range(min(Ho, 256), 0, -1)
                if Ho % d == 0 and (d % 8 == 0 or d == Ho)]
    if not th_cands:
        th_cands = [Ho]
    nb_cands = [d for d in range(N, 0, -1) if N % d == 0]
    best, best_key = None, None
    for th in th_cands:
        for nb in nb_cands:
            if nb > 1 and th % 8 != 0:
                continue          # batch folding needs tile-aligned row slabs
            if not fits(nb, th):
                continue
            m = nb * th
            steps = (N // nb) * (Ho // th)
            key = (steps >= 2, min(m, 256), -m, th)
            if best_key is None or key > best_key:
                best, best_key = (nb, th), key
    return best


def _make_kernel(*, KH, KW, Hp, th, nb, WoC, WoCo, row_base,
                 mxu_dtype, out_dtype, dw_on_mxu):
    """Kernel closed over all static constants."""
    T = KH * KW

    def taps(x_ref, bi, h0, cast_dtype):
        # x_ref: (nb, KW*Hp, WoC). Row segment kw holds the image copy whose lanes are
        # pre-shifted by tap kw, so every load is lane-aligned (no XLU lane rotate);
        # only the sublane start (h0) is dynamic.
        for kw in range(KW):
            for kh in range(KH):
                r0 = kw * Hp + row_base[kh]
                win = x_ref[bi, pl.ds(r0 + h0, th), :]
                yield kh * KW + kw, win.astype(cast_dtype)

    if dw_on_mxu:
        def kernel(x_ref, wtap_ref, bias_ref, o_ref):
            # wtap_ref: (T, Wo*Cin, Wo*Cout) per-tap block-diagonal weights
            h0 = pl.multiple_of(pl.program_id(1) * th, th)
            wt = [wtap_ref[t] for t in range(T)]          # load each tap weight once
            bias = bias_ref[...]
            for bi in range(nb):                          # per-batch M=th matmuls
                ob = jnp.zeros((th, WoCo), jnp.float32)
                for t, win in taps(x_ref, bi, h0, mxu_dtype):
                    ob = ob + jnp.dot(win, wt[t], preferred_element_type=jnp.float32)
                o_ref[bi] = (ob + bias).astype(out_dtype)
        return kernel

    def kernel(x_ref, wdw_ref, wbig_ref, bias_ref, o_ref):
        # wdw_ref : (T, Wo*Cin) lane-tiled depthwise taps (f32)
        # wbig_ref: (Wo*Cin, Wo*Cout) block-diagonal pointwise weight
        # bias_ref: (1, Wo*Cout) fused depthwise+pointwise bias
        h0 = pl.multiple_of(pl.program_id(1) * th, th)
        wdw = wdw_ref[...]
        accs = []
        for bi in range(nb):
            acc = jnp.zeros((th, WoC), jnp.float32)
            for t, win in taps(x_ref, bi, h0, jnp.float32):
                acc = acc + win * wdw[t:t + 1, :]
            accs.append(acc)
        # Fold the nb batch slabs into one LHS so the 1x1 contraction is a single MXU
        # matmul with M = nb*th.
        acc_all = accs[0] if nb == 1 else jnp.concatenate(accs, axis=0)
        out = jnp.dot(acc_all.astype(mxu_dtype), wbig_ref[...],
                      preferred_element_type=jnp.float32) + bias_ref[...]
        if nb == 1:
            o_ref[0] = out.astype(out_dtype)
        else:
            for bi in range(nb):       # tile-aligned (th % 8 == 0) sublane slices
                o_ref[bi] = out[bi * th:(bi + 1) * th, :].astype(out_dtype)
    return kernel


def depthwise_separable_conv(x_nchw, w_dw, b_dw, w_pw, b_pw, *,
                             stride=1, padding=1, nchw_out=True,
                             dw_on_mxu=False, use_bf16_mxu=False):
    """x_nchw: (N, Cin, H, W). Returns (N, Cout, Ho, Wo), matching PyTorch."""
    N, Cin, H, W = x_nchw.shape
    KH, KW = int(w_dw.shape[2]), int(w_dw.shape[3])
    Cout = int(w_pw.shape[0])
    Hp, Wp = H + 2 * padding, W + 2 * padding
    Ho = (Hp - KH) // stride + 1
    Wo = (Wp - KW) // stride + 1
    WpC = Wp * Cin
    WoC, WoCo = Wo * Cin, Wo * Cout

    in_item = np.dtype(x_nchw.dtype).itemsize
    out_item = in_item
    mxu_dtype = (jnp.bfloat16 if (x_nchw.dtype == jnp.bfloat16 or use_bf16_mxu)
                 else jnp.float32)
    mxu_item = np.dtype(mxu_dtype).itemsize

    # ---- stride-residue permutation bookkeeping (keeps every tap a contiguous slice).
    h_order = np.concatenate([np.arange(r, Hp, stride) for r in range(stride)])
    w_order = np.concatenate([np.arange(r, Wp, stride) for r in range(stride)])
    cnt_h = [len(range(r, Hp, stride)) for r in range(stride)]
    cnt_w = [len(range(r, Wp, stride)) for r in range(stride)]
    start_h = np.concatenate([[0], np.cumsum(cnt_h)])
    start_w = np.concatenate([[0], np.cumsum(cnt_w)])
    row_base = tuple(int(start_h[kh % stride] + kh // stride) for kh in range(KH))
    col_base = tuple(int((start_w[kw % stride] + kw // stride) * Cin)
                     for kw in range(KW))

    # ---- weights & fused bias (tiny; prepared once in plain JAX).
    f32 = jnp.float32
    wdw_taps = (jnp.transpose(w_dw[:, 0, :, :], (1, 2, 0))
                .reshape(KH * KW, Cin).astype(f32))
    wpw = jnp.transpose(w_pw[:, :, 0, 0], (1, 0)).astype(f32)      # (Cin, Cout)
    fused_bias = b_dw.astype(f32) @ wpw + b_pw.astype(f32)         # (Cout,)
    bias_tiled = jnp.tile(fused_bias, Wo).reshape(1, WoCo)
    eye_wo = jnp.eye(Wo, dtype=f32)
    if dw_on_mxu:
        # Per-tap block-diagonal weights: diag block j = wdw_taps[t] (col-scaled) @ wpw.
        wtaps = (jnp.einsum('ij,tc,co->ticjo', eye_wo, wdw_taps, wpw)
                 .reshape(KH * KW, WoC, WoCo).astype(mxu_dtype))
        weight_bytes = wtaps.size * mxu_item
    else:
        wdw_tiled = jnp.tile(wdw_taps, (1, Wo))                    # (T, Wo*Cin)
        wbig = (jnp.einsum('ij,co->icjo', eye_wo, wpw)
                .reshape(WoC, WoCo).astype(mxu_dtype))             # block-diag pointwise
        weight_bytes = wbig.size * mxu_item + wdw_tiled.size * 4

    # ---- VMEM budget, tile choice, and block-diag gating (generation aware).
    budget = _vmem_budget_bytes()

    def _footprint(nb, th):
        in_blk = nb * KW * Hp * WoC * in_item          # KW lane-shifted copies
        out_blk = nb * th * WoCo * out_item
        live = 4 * nb * th * (WoC + WoCo) * 4          # acc / windows / result slack
        return (2 * in_blk + 2 * out_blk + 2 * weight_bytes
                + 2 * bias_tiled.size * 4 + live)

    tiles = _choose_tiles(N, Ho, lambda nb, th: _footprint(nb, th) <= 0.8 * budget)
    if tiles is None or weight_bytes > budget // 6:
        # TODO(synk): large-channel / large-image regime needs a channels-last
        # (M*Wo, Cin) x (Cin, Cout) Pallas path with halo'd H tiling; until then fall
        # back to XLA conv so the block-diag weight never blows past VMEM (v7x: 64MiB).
        out = _lax_reference(x_nchw, w_dw, b_dw, w_pw, b_pw,
                             stride=stride, padding=padding)
        return out if nchw_out else jnp.transpose(out, (0, 2, 3, 1))
    nb, th = tiles

    # ---- input layout: NCHW -> NHWC -> pad -> stride permute -> (N, Hp, Wp*Cin),
    # then KW lane-shifted copies stacked along rows -> (N, KW*Hp, Wo*Cin) so every
    # in-kernel tap load is lane-aligned.
    # TODO(synk): when Wo*Cin < 128, additionally pack 128//(Wo*Cin) output rows into
    # the lane axis so the VPU / matmul-K run fully lane-dense.
    x_nhwc = jnp.transpose(x_nchw, (0, 2, 3, 1))
    x_pad = jnp.pad(x_nhwc, ((0, 0), (padding, padding), (padding, padding), (0, 0)))
    if stride > 1:
        x_pad = x_pad[:, h_order, :, :][:, :, w_order, :]
    x_flat = x_pad.reshape(N, Hp, WpC)
    x_shift = jnp.concatenate([x_flat[:, :, cb:cb + WoC] for cb in col_base], axis=1)

    kernel = _make_kernel(KH=KH, KW=KW, Hp=Hp, th=th, nb=nb, WoC=WoC, WoCo=WoCo,
                          row_base=row_base, mxu_dtype=mxu_dtype,
                          out_dtype=x_nchw.dtype, dw_on_mxu=dw_on_mxu)

    grid = (N // nb, Ho // th)
    x_spec = pl.BlockSpec((nb, KW * Hp, WoC), lambda b, h: (b, 0, 0))
    bias_spec = pl.BlockSpec((1, WoCo), lambda b, h: (0, 0))
    out_spec = pl.BlockSpec((nb, th, WoCo), lambda b, h: (b, h, 0))
    if dw_on_mxu:
        in_specs = [x_spec,
                    pl.BlockSpec((KH * KW, WoC, WoCo), lambda b, h: (0, 0, 0)),
                    bias_spec]
        operands = (x_shift, wtaps, bias_tiled)
    else:
        in_specs = [x_spec,
                    pl.BlockSpec((KH * KW, WoC), lambda b, h: (0, 0)),
                    pl.BlockSpec((WoC, WoCo), lambda b, h: (0, 0)),
                    bias_spec]
        operands = (x_shift, wdw_tiled, wbig, bias_tiled)

    vmem_limit = int(min(budget, max(32 * 1024 * 1024, 2 * _footprint(nb, th))))

    matmul_flops = 2 * N * Ho * WoC * WoCo * (KH * KW if dw_on_mxu else 1)
    dw_flops = 0 if dw_on_mxu else 2 * N * Ho * Wo * Cin * KH * KW
    cost = pl.CostEstimate(
        flops=int(dw_flops + matmul_flops),
        transcendentals=0,
        bytes_accessed=int(x_shift.size * in_item + weight_bytes
                           + bias_tiled.size * 4 + N * Ho * WoCo * out_item))

    out_flat = pl.pallas_call(
        kernel,
        out_shape=jax.ShapeDtypeStruct((N, Ho, WoCo), x_nchw.dtype),
        grid_spec=pltpu.PrefetchScalarGridSpec(
            num_scalar_prefetch=0,
            grid=grid,
            in_specs=in_specs,
            out_specs=out_spec,
        ),
        compiler_params=pltpu.CompilerParams(
            dimension_semantics=("parallel", "parallel"),
            vmem_limit_bytes=vmem_limit),
        cost_estimate=cost,
    )(*operands)

    out_nhwc = out_flat.reshape(N, Ho, Wo, Cout)
    if not nchw_out:
        return out_nhwc
    return jnp.transpose(out_nhwc, (0, 3, 1, 2))


if __name__ == "__main__":
    key = jax.random.PRNGKey(0)
    N, Cin, H, W = 2, 4, 16, 16
    Cout, K, stride, padding = 8, 3, 1, 1

    kx, k1, k2, k3, k4 = jax.random.split(key, 5)
    x = jax.random.normal(kx, (N, Cin, H, W), dtype=jnp.float32)
    # Deterministic "Conv2d-like" parameter init (uniform), PyTorch layouts.
    w_dw = jax.random.uniform(k1, (Cin, 1, K, K), jnp.float32, -0.3, 0.3)
    b_dw = jax.random.uniform(k2, (Cin,), jnp.float32, -0.3, 0.3)
    w_pw = jax.random.uniform(k3, (Cout, Cin, 1, 1), jnp.float32, -0.5, 0.5)
    b_pw = jax.random.uniform(k4, (Cout,), jnp.float32, -0.5, 0.5)

    ref = _lax_reference(x, w_dw, b_dw, w_pw, b_pw, stride=stride, padding=padding)

    # 1) Default path: VPU depthwise + single block-diagonal MXU matmul.
    run = jax.jit(functools.partial(depthwise_separable_conv,
                                    stride=stride, padding=padding))
    out = run(x, w_dw, b_dw, w_pw, b_pw)
    jax.block_until_ready(out)
    assert out.shape == (N, Cout, H, W), out.shape
    assert jnp.allclose(out, ref, atol=1e-4, rtol=1e-4), "mismatch (default path)"

    # 2) Depthwise folded onto the MXU (per-tap block-diagonal weights).
    run_mxu = jax.jit(functools.partial(depthwise_separable_conv, stride=stride,
                                        padding=padding, dw_on_mxu=True))
    out_mxu = run_mxu(x, w_dw, b_dw, w_pw, b_pw)
    jax.block_until_ready(out_mxu)
    assert jnp.allclose(out_mxu, ref, atol=1e-4, rtol=1e-4), "mismatch (dw_on_mxu)"

    # 3) Stride-2 path (stride-residue permutation, nb=1).
    run_s2 = jax.jit(functools.partial(depthwise_separable_conv,
                                       stride=2, padding=padding))
    out_s2 = run_s2(x, w_dw, b_dw, w_pw, b_pw)
    jax.block_until_ready(out_s2)
    ref_s2 = _lax_reference(x, w_dw, b_dw, w_pw, b_pw, stride=2, padding=padding)
    assert out_s2.shape == ref_s2.shape, (out_s2.shape, ref_s2.shape)
    assert jnp.allclose(out_s2, ref_s2, atol=1e-4, rtol=1e-4), "mismatch (stride 2)"

    # 4) Batch folding: N=4 selects nb=2, so one grid step does an M=32 matmul.
    x4 = jax.random.normal(jax.random.PRNGKey(1), (4, Cin, H, W), dtype=jnp.float32)
    out_b = run(x4, w_dw, b_dw, w_pw, b_pw)
    jax.block_until_ready(out_b)
    ref_b = _lax_reference(x4, w_dw, b_dw, w_pw, b_pw, stride=stride, padding=padding)
    assert jnp.allclose(out_b, ref_b, atol=1e-4, rtol=1e-4), "mismatch (batch fold)"

    print("KERNEL_OK")
</pallas_src>

<mosaic_0001>
module attributes {stable_mosaic.version = 11 : i64} {
  func.func @kernel(%arg0: i32, %arg1: i32, %arg2: memref<1x54x64xf32, #tpu.memory_space<vmem>>, %arg3: memref<9x64xf32, #tpu.memory_space<vmem>>, %arg4: memref<64x128xf32, #tpu.memory_space<vmem>>, %arg5: memref<1x128xf32, #tpu.memory_space<vmem>>, %arg6: memref<1x16x128xf32, #tpu.memory_space<vmem>>) attributes {dimension_semantics = [#tpu.dimension_semantics<parallel>, #tpu.dimension_semantics<parallel>], iteration_bounds = array<i64: 2, 1>, scalar_prefetch = 0 : i64, scratch_operands = 0 : i64, tpu.core_type = #tpu.core_type<tc>, window_params = [{transform_indices = @transform_0, window_bounds = array<i64: 1, 54, 64>}, {pipeline_mode = #tpu.pipeline_mode<synchronous>, transform_indices = @transform_1, window_bounds = array<i64: 9, 64>}, {pipeline_mode = #tpu.pipeline_mode<synchronous>, transform_indices = @transform_2, window_bounds = array<i64: 64, 128>}, {pipeline_mode = #tpu.pipeline_mode<synchronous>, transform_indices = @transform_3, window_bounds = array<i64: 1, 128>}, {transform_indices = @transform_4, window_bounds = array<i64: 1, 16, 128>}]} {
    %c16_i32 = arith.constant 16 : i32
    %0 = arith.muli %arg1, %c16_i32 : i32
    %1 = tpu.assume_multiple %0, 16 : i32
    %c0 = arith.constant 0 : index
    %c0_0 = arith.constant 0 : index
    %2 = vector.load %arg3[%c0, %c0_0] : memref<9x64xf32, #tpu.memory_space<vmem>>, vector<9x64xf32>
    %cst = arith.constant 0.000000e+00 : f32
    %3 = vector.broadcast %cst : f32 to vector<16x64xf32>
    %c0_i32 = arith.constant 0 : i32
    %4 = arith.addi %c0_i32, %1 : i32
    %c0_1 = arith.constant 0 : index
    %5 = arith.index_cast %4 : i32 to index
    %c0_2 = arith.constant 0 : index
    %6 = vector.load %arg2[%c0_1, %5, %c0_2] : memref<1x54x64xf32, #tpu.memory_space<vmem>>, vector<1x16x64xf32>
    %7 = vector.shape_cast %6 : vector<1x16x64xf32> to vector<16x64xf32>
    %8 = vector.extract_strided_slice %2 {offsets = [0, 0], sizes = [1, 64], strides = [1, 1]} : vector<9x64xf32> to vector<1x64xf32>
    %9 = vector.broadcast %8 : vector<1x64xf32> to vector<16x64xf32>
    %10 = arith.mulf %7, %9 : vector<16x64xf32>
    %11 = arith.addf %3, %10 : vector<16x64xf32>
    %c1_i32 = arith.constant 1 : i32
    %12 = arith.addi %c1_i32, %1 : i32
    %c0_3 = arith.constant 0 : index
    %13 = arith.index_cast %12 : i32 to index
    %c0_4 = arith.constant 0 : index
    %14 = vector.load %arg2[%c0_3, %13, %c0_4] : memref<1x54x64xf32, #tpu.memory_space<vmem>>, vector<1x16x64xf32>
    %15 = vector.shape_cast %14 : vector<1x16x64xf32> to vector<16x64xf32>
    %16 = vector.extract_strided_slice %2 {offsets = [3, 0], sizes = [1, 64], strides = [1, 1]} : vector<9x64xf32> to vector<1x64xf32>
    %17 = vector.broadcast %16 : vector<1x64xf32> to vector<16x64xf32>
    %18 = arith.mulf %15, %17 : vector<16x64xf32>
    %19 = arith.addf %11, %18 : vector<16x64xf32>
    %c2_i32 = arith.constant 2 : i32
    %20 = arith.addi %c2_i32, %1 : i32
    %c0_5 = arith.constant 0 : index
    %21 = arith.index_cast %20 : i32 to index
    %c0_6 = arith.constant 0 : index
    %22 = vector.load %arg2[%c0_5, %21, %c0_6] : memref<1x54x64xf32, #tpu.memory_space<vmem>>, vector<1x16x64xf32>
    %23 = vector.shape_cast %22 : vector<1x16x64xf32> to vector<16x64xf32>
    %24 = vector.extract_strided_slice %2 {offsets = [6, 0], sizes = [1, 64], strides = [1, 1]} : vector<9x64xf32> to vector<1x64xf32>
    %25 = vector.broadcast %24 : vector<1x64xf32> to vector<16x64xf32>
    %26 = arith.mulf %23, %25 : vector<16x64xf32>
    %27 = arith.addf %19, %26 : vector<16x64xf32>
    %c18_i32 = arith.constant 18 : i32
    %28 = arith.addi %c18_i32, %1 : i32
    %c0_7 = arith.constant 0 : index
    %29 = arith.index_cast %28 : i32 to index
    %c0_8 = arith.constant 0 : index
    %30 = vector.load %arg2[%c0_7, %29, %c0_8] : memref<1x54x64xf32, #tpu.memory_space<vmem>>, vector<1x16x64xf32>
    %31 = vector.shape_cast %30 : vector<1x16x64xf32> to vector<16x64xf32>
    %32 = vector.extract_strided_slice %2 {offsets = [1, 0], sizes = [1, 64], strides = [1, 1]} : vector<9x64xf32> to vector<1x64xf32>
    %33 = vector.broadcast %32 : vector<1x64xf32> to vector<16x64xf32>
    %34 = arith.mulf %31, %33 : vector<16x64xf32>
    %35 = arith.addf %27, %34 : vector<16x64xf32>
    %c19_i32 = arith.constant 19 : i32
    %36 = arith.addi %c19_i32, %1 : i32
    %c0_9 = arith.constant 0 : index
    %37 = arith.index_cast %36 : i32 to index
    %c0_10 = arith.constant 0 : index
    %38 = vector.load %arg2[%c0_9, %37, %c0_10] : memref<1x54x64xf32, #tpu.memory_space<vmem>>, vector<1x16x64xf32>
    %39 = vector.shape_cast %38 : vector<1x16x64xf32> to vector<16x64xf32>
    %40 = vector.extract_strided_slice %2 {offsets = [4, 0], sizes = [1, 64], strides = [1, 1]} : vector<9x64xf32> to vector<1x64xf32>
    %41 = vector.broadcast %40 : vector<1x64xf32> to vector<16x64xf32>
    %42 = arith.mulf %39, %41 : vector<16x64xf32>
    %43 = arith.addf %35, %42 : vector<16x64xf32>
    %c20_i32 = arith.constant 20 : i32
    %44 = arith.addi %c20_i32, %1 : i32
    %c0_11 = arith.constant 0 : index
    %45 = arith.index_cast %44 : i32 to index
    %c0_12 = arith.constant 0 : index
    %46 = vector.load %arg2[%c0_11, %45, %c0_12] : memref<1x54x64xf32, #tpu.memory_space<vmem>>, vector<1x16x64xf32>
    %47 = vector.shape_cast %46 : vector<1x16x64xf32> to vector<16x64xf32>
    %48 = vector.extract_strided_slice %2 {offsets = [7, 0], sizes = [1, 64], strides = [1, 1]} : vector<9x64xf32> to vector<1x64xf32>
    %49 = vector.broadcast %48 : vector<1x64xf32> to vector<16x64xf32>
    %50 = arith.mulf %47, %49 : vector<16x64xf32>
    %51 = arith.addf %43, %50 : vector<16x64xf32>
    %c36_i32 = arith.constant 36 : i32
    %52 = arith.addi %c36_i32, %1 : i32
    %c0_13 = arith.constant 0 : index
    %53 = arith.index_cast %52 : i32 to index
    %c0_14 = arith.constant 0 : index
    %54 = vector.load %arg2[%c0_13, %53, %c0_14] : memref<1x54x64xf32, #tpu.memory_space<vmem>>, vector<1x16x64xf32>
    %55 = vector.shape_cast %54 : vector<1x16x64xf32> to vector<16x64xf32>
    %56 = vector.extract_strided_slice %2 {offsets = [2, 0], sizes = [1, 64], strides = [1, 1]} : vector<9x64xf32> to vector<1x64xf32>
    %57 = vector.broadcast %56 : vector<1x64xf32> to vector<16x64xf32>
    %58 = arith.mulf %55, %57 : vector<16x64xf32>
    %59 = arith.addf %51, %58 : vector<16x64xf32>
    %c37_i32 = arith.constant 37 : i32
    %60 = arith.addi %c37_i32, %1 : i32
    %c0_15 = arith.constant 0 : index
    %61 = arith.index_cast %60 : i32 to index
    %c0_16 = arith.constant 0 : index
    %62 = vector.load %arg2[%c0_15, %61, %c0_16] : memref<1x54x64xf32, #tpu.memory_space<vmem>>, vector<1x16x64xf32>
    %63 = vector.shape_cast %62 : vector<1x16x64xf32> to vector<16x64xf32>
    %64 = vector.extract_strided_slice %2 {offsets = [5, 0], sizes = [1, 64], strides = [1, 1]} : vector<9x64xf32> to vector<1x64xf32>
    %65 = vector.broadcast %64 : vector<1x64xf32> to vector<16x64xf32>
    %66 = arith.mulf %63, %65 : vector<16x64xf32>
    %67 = arith.addf %59, %66 : vector<16x64xf32>
    %c38_i32 = arith.constant 38 : i32
    %68 = arith.addi %c38_i32, %1 : i32
    %c0_17 = arith.constant 0 : index
    %69 = arith.index_cast %68 : i32 to index
    %c0_18 = arith.constant 0 : index
    %70 = vector.load %arg2[%c0_17, %69, %c0_18] : memref<1x54x64xf32, #tpu.memory_space<vmem>>, vector<1x16x64xf32>
    %71 = vector.shape_cast %70 : vector<1x16x64xf32> to vector<16x64xf32>
    %72 = vector.extract_strided_slice %2 {offsets = [8, 0], sizes = [1, 64], strides = [1, 1]} : vector<9x64xf32> to vector<1x64xf32>
    %73 = vector.broadcast %72 : vector<1x64xf32> to vector<16x64xf32>
    %74 = arith.mulf %71, %73 : vector<16x64xf32>
    %75 = arith.addf %67, %74 : vector<16x64xf32>
    %c0_19 = arith.constant 0 : index
    %c0_20 = arith.constant 0 : index
    %76 = vector.load %arg4[%c0_19, %c0_20] : memref<64x128xf32, #tpu.memory_space<vmem>>, vector<64x128xf32>
    %cst_21 = arith.constant dense<0.000000e+00> : vector<16x128xf32>
    %77 = tpu.matmul %75, %76, %cst_21 {dimension_numbers = #tpu.dot_dimension_numbers<[1], [0], [0], [1], [0, 0, 1, 1], [], []>} : vector<16x64xf32>, vector<64x128xf32>, vector<16x128xf32> -> vector<16x128xf32>
    %c0_22 = arith.constant 0 : index
    %c0_23 = arith.constant 0 : index
    %78 = vector.load %arg5[%c0_22, %c0_23] : memref<1x128xf32, #tpu.memory_space<vmem>>, vector<1x128xf32>
    %79 = vector.broadcast %78 : vector<1x128xf32> to vector<16x128xf32>
    %80 = arith.addf %77, %79 : vector<16x128xf32>
    %c0_24 = arith.constant 0 : index
    %c0_25 = arith.constant 0 : index
    %c0_26 = arith.constant 0 : index
    %81 = vector.load %arg6[%c0_24, %c0_25, %c0_26] : memref<1x16x128xf32, #tpu.memory_space<vmem>>, vector<1x16x128xf32>
    %82 = vector.shape_cast %81 : vector<1x16x128xf32> to vector<16x128xf32>
    %83 = vector.shape_cast %80 : vector<16x128xf32> to vector<1x16x128xf32>
    tpu.vector_store %arg6[%c0_24, %c0_25, %c0_26], %83 {strides = array<i32>} : memref<1x16x128xf32, #tpu.memory_space<vmem>>, vector<1x16x128xf32>,
    return
  }
  func.func @transform_0(%arg0: i32, %arg1: i32) -> (i32, i32, i32) {
    %c0_i32 = arith.constant 0 : i32
    %c0_i32_0 = arith.constant 0 : i32
    %c0_i32_1 = arith.constant 0 : i32
    return %arg0, %c0_i32, %c0_i32_0 : i32, i32, i32
  }
  func.func @transform_1(%arg0: i32, %arg1: i32) -> (i32, i32) {
    %c0_i32 = arith.constant 0 : i32
    %c0_i32_0 = arith.constant 0 : i32
    %c0_i32_1 = arith.constant 0 : i32
    return %c0_i32, %c0_i32_0 : i32, i32
  }
  func.func @transform_2(%arg0: i32, %arg1: i32) -> (i32, i32) {
    %c0_i32 = arith.constant 0 : i32
    %c0_i32_0 = arith.constant 0 : i32
    %c0_i32_1 = arith.constant 0 : i32
    return %c0_i32, %c0_i32_0 : i32, i32
  }
  func.func @transform_3(%arg0: i32, %arg1: i32) -> (i32, i32) {
    %c0_i32 = arith.constant 0 : i32
    %c0_i32_0 = arith.constant 0 : i32
    %c0_i32_1 = arith.constant 0 : i32
    return %c0_i32, %c0_i32_0 : i32, i32
  }
  func.func @transform_4(%arg0: i32, %arg1: i32) -> (i32, i32, i32) {
    %c0_i32 = arith.constant 0 : i32
    %c0_i32_0 = arith.constant 0 : i32
    return %arg0, %arg1, %c0_i32 : i32, i32, i32
  }
}

</mosaic_0001>

<bundles_post_ra>
// kernel: tile.12
= control target key start
LH: loop header
LB: loop body
LE: loop exit
PB: predicated region body
PF: predicated region fallthrough
CT: control target
= control target key end

     0   :  { %s28_s0 = inlined_call_operand.vmem [shape: f32[8], index: 0, kind: input, shape index: {}]   ;;  %s29_s1 = inlined_call_operand.vmem [shape: f32[16,8], index: 1, kind: output, shape index: {}]  }
   0x1   :  { %v4_v0 = vld [vmem:[%s28_s0] ss:$0 sm:$0xff] }
   0x2   :  { %5 = vst [vmem:[%s29_s1] sm:$0xff] %v4_v0  ;;  %8 = vst [vmem:[%s29_s1 + $0x8] sm:$0xff] %v4_v0 }

// kernel: tile.13
= control target key start
LH: loop header
LB: loop body
LE: loop exit
PB: predicated region body
PF: predicated region fallthrough
CT: control target
= control target key end

     0   :  { %s133_s10 = smov 120   ;;  %s134_s11 = smov 104   ;;  %vm3_vm0 = vcmask 64512   ;;  %vm9_vm1 = vcmask 1048512   ;;  %vm15_vm2 = vcmask 982912   ;;  %vm21_vm3 = vcmask 917312   ;;  %s209_s0 = inlined_call_operand.vmem [shape: f32[16,8], index: 0, kind: input, shape index: {}]   ;;  %s210_s1 = inlined_call_operand.vmem [shape: f32[1,128], index: 1, kind: output, shape index: {}]  }
   0x1   :  { %v103_v0 = vld [vmem:[%s209_s0 + $0xf] sm:$0x1]   ;;  %v105_v1 = vld [vmem:[%s209_s0 + $0xd] sm:$0x1]   ;;  %v104_v2 = vld [vmem:[%s209_s0 + $0xe] sm:$0x1]  }
   0x2   :  { %7 = vrot.lane.b32.xlu0 %v103_v0, %s133_s10  ;;  %19 = vrot.lane.b32.xlu1 %v105_v1, %s134_s11  ;;  %v106_v3 = vld [vmem:[%s209_s0 + $0xc] sm:$0x1]   ;;  %s135_s16 = smov 112   ;;  %s136_s17 = smov 96   ;;  %v107_v4 = vld [vmem:[%s209_s0 + $0xb] sm:$0x1]  }
   0x3   :  { %v108_v5 = vld [vmem:[%s209_s0 + $0xa] sm:$0x1]   ;;  %v2_v6 = vld [vmem:[%s209_s0] sm:$0x1]   ;;  %s137_s24 = smov 88   ;;  %s138_s25 = smov 80  }
   0x4   :  { %4 = vst.msk [vmem:[#allocation0] sm:$0x1] %vm3_vm0, %v2_v6   ;;  %v109_v7 = vld [vmem:[%s209_s0 + $0x9] sm:$0x1]   ;;  %v110_v8 = vld [vmem:[%s209_s0 + $0x8] sm:$0x1]  }
   0x5   :  { %s139_s30 = smov 72   ;;  %s140_s2 = smov 64   ;;  %v111_v9 = vld [vmem:[%s209_s0 + $0x7] sm:$0x1]   ;;  %v112_v10 = vld [vmem:[%s209_s0 + $0x6] sm:$0x1]  }
   0x6   :  { %13 = vrot.lane.b32.xlu0 %v104_v2, %s135_s16  ;;  %25 = vrot.lane.b32.xlu1 %v106_v3, %s136_s17  ;;  %s141_s7 = smov 56   ;;  %s142_s8 = smov 48   ;;  %v113_v11 = vld [vmem:[%s209_s0 + $0x5] sm:$0x1]   ;;  %v114_v12 = vld [vmem:[%s209_s0 + $0x4] sm:$0x1]  }
   0x7   :  { %s143_s13 = smov 40   ;;  %s144_s14 = smov 32   ;;  %v115_v13 = vld [vmem:[%s209_s0 + $0x3] sm:$0x1]   ;;  %v116_v14 = vld [vmem:[%s209_s0 + $0x2] sm:$0x1]  }
   0x8   :  { %s145_s19 = smov 24   ;;  %s146_s20 = smov 16   ;;  %v117_v15 = vld [vmem:[%s209_s0 + $0x1] sm:$0x1]   ;;  %vm27_vm4 = vcmask 851712   ;;  %vm33_vm5 = vcmask 786112  }
   0x9   :  { %s147_s0 = smov 8   ;;  %vm39_vm6 = vcmask 720512   ;;  %vm45_vm7 = vcmask 654912   ;;  %vm51_vm8 = vcmask 589312   ;;  %vm57_vm9 = vcmask 523712  }
   0xa   :  { %31 = vrot.lane.b32.xlu0 %v107_v4, %s137_s24  ;;  %37 = vrot.lane.b32.xlu1 %v108_v5, %s138_s25  ;;  %vm63_vm10 = vcmask 458112   ;;  %vm69_vm11 = vcmask 392512   ;;  %vm75_vm12 = vcmask 326912   ;;  %vm81_vm13 = vcmask 261312  }
   0xb   :  { %vm87_vm14 = vcmask 195712   ;;  %vm93_vm15 = vcmask 130112  }
   0xe   :  { %43 = vrot.lane.b32.xlu0 %v109_v7, %s139_s30  ;;  %49 = vrot.lane.b32.xlu1 %v110_v8, %s140_s2 }
  0x12   :  { %55 = vrot.lane.b32.xlu0 %v111_v9, %s141_s7  ;;  %61 = vrot.lane.b32.xlu1 %v112_v10, %s142_s8 }
  0x16   :  { %67 = vrot.lane.b32.xlu0 %v113_v11, %s143_s13  ;;  %73 = vrot.lane.b32.xlu1 %v114_v12, %s144_s14 }
  0x1a   :  { %79 = vrot.lane.b32.xlu0 %v115_v13, %s145_s19  ;;  %85 = vrot.lane.b32.xlu1 %v116_v14, %s146_s20 }
  0x1e   :  { %91 = vrot.lane.b32.xlu0 %v117_v15, %s147_s0 }
  0x74   :  { %v8_v16 = vpop.permute.xlu0 %7   ;;  %v20_v17 = vpop.permute.xlu1 %19  }
  0x75   :  { %10 = vst.msk [vmem:[#allocation0] sm:$0x1] %vm9_vm1, %v8_v16  }
  0x78   :  { %v14_v18 = vpop.permute.xlu0 %13   ;;  %v26_v19 = vpop.permute.xlu1 %25  }
  0x79   :  { %16 = vst.msk [vmem:[#allocation0] sm:$0x1] %vm15_vm2, %v14_v18  }
  0x7a   :  { %22 = vst.msk [vmem:[#allocation0] sm:$0x1] %vm21_vm3, %v20_v17  }
  0x7b   :  { %28 = vst.msk [vmem:[#allocation0] sm:$0x1] %vm27_vm4, %v26_v19  }
  0x7c   :  { %v32_v20 = vpop.permute.xlu0 %31   ;;  %v38_v21 = vpop.permute.xlu1 %37  }
  0x7d   :  { %34 = vst.msk [vmem:[#allocation0] sm:$0x1] %vm33_vm5, %v32_v20  }
  0x7e   :  { %40 = vst.msk [vmem:[#allocation0] sm:$0x1] %vm39_vm6, %v38_v21  }
  0x80   :  { %v44_v22 = vpop.permute.xlu0 %43   ;;  %v50_v23 = vpop.permute.xlu1 %49  }
  0x81   :  { %46 = vst.msk [vmem:[#allocation0] sm:$0x1] %vm45_vm7, %v44_v22  }
  0x82   :  { %52 = vst.msk [vmem:[#allocation0] sm:$0x1] %vm51_vm8, %v50_v23  }
  0x84   :  { %v56_v24 = vpop.permute.xlu0 %55   ;;  %v62_v25 = vpop.permute.xlu1 %61  }
  0x85   :  { %58 = vst.msk [vmem:[#allocation0] sm:$0x1] %vm57_vm9, %v56_v24  }
  0x86   :  { %64 = vst.msk [vmem:[#allocation0] sm:$0x1] %vm63_vm10, %v62_v25  }
  0x88   :  { %v68_v26 = vpop.permute.xlu0 %67   ;;  %v74_v27 = vpop.permute.xlu1 %73  }
  0x89   :  { %70 = vst.msk [vmem:[#allocation0] sm:$0x1] %vm69_vm11, %v68_v26  }
  0x8a   :  { %76 = vst.msk [vmem:[#allocation0] sm:$0x1] %vm75_vm12, %v74_v27  }
  0x8c   :  { %v80_v28 = vpop.permute.xlu0 %79   ;;  %v86_v29 = vpop.permute.xlu1 %85  }
  0x8d   :  { %82 = vst.msk [vmem:[#allocation0] sm:$0x1] %vm81_vm13, %v80_v28  }
  0x8e   :  { %88 = vst.msk [vmem:[#allocation0] sm:$0x1] %vm87_vm14, %v86_v29  }
  0x90   :  { %v92_v30 = vpop.permute.xlu0 %91  }
  0x91   :  { %94 = vst.msk [vmem:[#allocation0] sm:$0x1] %vm93_vm15, %v92_v30  }
  0x98   :  { %v99_v31 = vld [vmem:[#allocation0] sm:$0x1] }
  0x99   :  { %102 = vst [vmem:[%s210_s1] sm:$0x1] %v99_v31 }

// kernel: depthwise_separable_conv.1
= control target key start
LH: loop header
LB: loop body
LE: loop exit
PB: predicated region body
PF: predicated region fallthrough
CT: control target
= control target key end

     0   :  { %s671_s15 = smov 0   ;;  %s673_s16 = smov 0   ;;  %s781_s0 = inlined_call_operand.vmem [shape: f32[2,54,64], index: 0, kind: input, shape index: {}]   ;;  %s782_s1 = inlined_call_operand.vmem [shape: f32[9,64], index: 1, kind: input, shape index: {}]   ;;  %s783_s2 = inlined_call_operand.vmem [shape: f32[64,128], index: 2, kind: input, shape index: {}]   ;;  %s784_s3 = inlined_call_operand.vmem [shape: f32[1,128], index: 3, kind: input, shape index: {}]   ;;  %s785_s4 = inlined_call_operand.vmem [shape: f32[2,16,128], index: 4, kind: output, shape index: {}]  }
   0x1   :  { %s675_s17 = smov 0  }
   0x2 LB: > { %s26_s18 = sadd.s32 1, %s640_s16  ;;  %p541_p0 = scmp.ge.s32.totalorder %s644_s17, 1  ;;  %s644_s17 = sphi %s675_s17, %s14_s17   ;;  %s640_s16 = sphi %s673_s16, %s787_s16   ;;  %s636_s15 = sphi %s671_s15, %s786_s15  }
   0x3   : > { %p28_p1 = scmp.ge.s32.totalorder %s26_s18, 2  ;;  %p176_p2 = scmp.lt.s32.totalorder %s644_s17, 3 }
   0x5   : > { %s789_s18 = smov (%p28_p1, %s26_s18), 0  ;;  %p177_p3 = pnand %p541_p0, %p176_p2 }
   0x6   : > { %p206_p4 = scmp.lt.s32.totalorder (!%p177_p3), %s636_s15, 1 }
   0x7   : > { %180 = sbr.rel (%p177_p3) target bundleno = 237 (0xed), region = 36 }
   0xc   : > { %v338_v0 = vld [vmem:[%s783_s2 + $0x38] sm:$0xff]  ;;  %v337_v1 = vld [vmem:[%s783_s2 + $0x30] sm:$0xff]  ;;  %v227_v2 = vlaneseq  ;;  %v336_v3 = vld [vmem:[%s783_s2 + $0x28] sm:$0xff]  ;;  %s791_s15 = smov (!%p206_p4, %s636_s15), 1  ;;  %vm346_vm0 = vcmask 523264  }
   0xd   : > { %578 = vmatprep.subr.mxu0 %v338_v0  ;;  %v705_v5 = vld [vmem:[%s782_s1] sm:$0xff]  ;;  %s597_s29 = smul.u32 56, %s791_s15  ;;  %v334_v13 = vld [vmem:[%s783_s2 + $0x18] sm:$0xff]  ;;  %v333_v14 = vld [vmem:[%s783_s2 + $0x10] sm:$0xff]  ;;  %s567_s21 = sshll.u32 %s791_s15, 4 }
   0xe   : > { %579 = vmatpush3.msra.mxu0 %v338_v0  ;;  %v700_v4 = vshrl.u32 %v227_v2, 7  ;;  %v335_v6 = vld [vmem:[%s783_s2 + $0x20] sm:$0xff]  ;;  %v332_v36 = vld [vmem:[%s783_s2 + $0x8] sm:$0xff]  ;;  %s219_s26 = scalar_lea.vmem %s785_s4, %s567_s21 }
   0xf   : > { %580 = vmatprep.subr.mxu0 %v337_v1  ;;  %s726_s10 = scalar_lea.vmem %s781_s0, %s597_s29  ;;  %v331_v45 = vld [vmem:[%s783_s2] sm:$0xff]  ;;  %v561_v63 = vld [vmem:[%s782_s1 + $0x8] ss:$0 sm:$0xff] }
  0x10   : > { %581 = vmatpush3.msra.mxu0 %v337_v1  ;;  %v229_v7 = vsub.s32 0, %v700_v4  ;;  %v241_v8 = vsub.s32 3, %v700_v4  ;;  %v253_v9 = vsub.s32 6, %v700_v4  ;;  %v265_v10 = vsub.s32 1, %v700_v4  ;;  %v225_v19 = vld [vmem:[%s726_s10] sm:$0xff]  ;;  %v226_v20 = vld [vmem:[%s726_s10 + $0x8] sm:$0xff] }
  0x11   : > { %582 = vmatprep.subr.mxu0 %v336_v3  ;;  %v277_v11 = vsub.s32 4, %v700_v4  ;;  %v289_v12 = vsub.s32 7, %v700_v4  ;;  %v545_v21 = vld [vmem:[%s726_s10 + $0x1] sm:$0xff]  ;;  %v301_v22 = vsub.s32 2, %v700_v4  ;;  %v546_v25 = vld [vmem:[%s726_s10 + $0x9] sm:$0xff]  ;;  %v549_v33 = vld [vmem:[%s726_s10 + $0x12] sm:$0xff] }
  0x12   : > { %583 = vmatpush3.msra.mxu0 %v336_v3  ;;  %v230_v15 = vrot.slane %v705_v5, %v229_v7  ;;  %v242_v16 = vrot.slane %v705_v5, %v241_v8  ;;  %v254_v17 = vrot.slane %v705_v5, %v253_v9  ;;  %v266_v18 = vrot.slane %v705_v5, %v265_v10  ;;  %v547_v27 = vld [vmem:[%s726_s10 + $0x2] sm:$0xff]  ;;  %v548_v28 = vld [vmem:[%s726_s10 + $0xa] sm:$0xff]  ;;  %v550_v34 = vld [vmem:[%s726_s10 + $0x1a] sm:$0xff] }
  0x13   : > { %584 = vmatprep.subr.mxu0 %v335_v6  ;;  %v278_v29 = vrot.slane %v705_v5, %v277_v11  ;;  %v551_v35 = vld [vmem:[%s726_s10 + $0x13] sm:$0xff]  ;;  %v552_v39 = vld [vmem:[%s726_s10 + $0x1b] sm:$0xff]  ;;  %v290_v40 = vrot.slane %v705_v5, %v289_v12  ;;  %v313_v41 = vsub.s32 5, %v700_v4  ;;  %v302_v49 = vrot.slane %v705_v5, %v301_v22  ;;  %v555_v51 = vld [vmem:[%s726_s10 + $0x24] sm:$0xff] }
  0x14   : > { %585 = vmatpush3.msra.mxu0 %v335_v6  ;;  %v231_v23 = vmul.f32 %v230_v15, %v225_v19  ;;  %v232_v24 = vmul.f32 %v230_v15, %v226_v20  ;;  %v243_v26 = vmul.f32 %v545_v21, %v242_v16  ;;  %v244_v30 = vmul.f32 %v546_v25, %v242_v16  ;;  %v553_v43 = vld [vmem:[%s726_s10 + $0x14] sm:$0xff]  ;;  %v554_v48 = vld [vmem:[%s726_s10 + $0x1c] sm:$0xff]  ;;  %v556_v55 = vld [vmem:[%s726_s10 + $0x2c] sm:$0xff] }
  0x15   : > { %586 = vmatprep.subr.mxu0 %v334_v13  ;;  %v255_v31 = vmul.f32 %v547_v27, %v254_v17  ;;  %v256_v32 = vmul.f32 %v548_v28, %v254_v17  ;;  %v267_v38 = vmul.f32 %v549_v33, %v266_v18  ;;  %v268_v42 = vmul.f32 %v550_v34, %v266_v18  ;;  %v557_v58 = vld [vmem:[%s726_s10 + $0x25] sm:$0xff]  ;;  %v558_v62 = vld [vmem:[%s726_s10 + $0x2d] sm:$0xff]  ;;  %v562_v16 = vld [vmem:[%s784_s3] ss:$0 sm:$0xff] }
  0x16   : > { %587 = vmatpush3.msra.mxu0 %v334_v13  ;;  %v245_v37 = vadd.f32 %v243_v26, %v231_v23  ;;  %v246_v44 = vadd.f32 %v244_v30, %v232_v24  ;;  %v279_v47 = vmul.f32 %v551_v35, %v278_v29  ;;  %v280_v50 = vmul.f32 %v552_v39, %v278_v29  ;;  %v559_v1 = vld [vmem:[%s726_s10 + $0x26] sm:$0xff]  ;;  %v560_v6 = vld [vmem:[%s726_s10 + $0x2e] sm:$0xff] }
  0x17   : > { %588 = vmatprep.subr.mxu0 %v333_v14  ;;  %v291_v54 = vmul.f32 %v553_v43, %v290_v40  ;;  %v314_v56 = vrot.slane %v705_v5, %v313_v41  ;;  %v292_v57 = vmul.f32 %v554_v48, %v290_v40  ;;  %v303_v61 = vmul.f32 %v555_v51, %v302_v49 }
  0x18   : > { %589 = vmatpush3.msra.mxu0 %v333_v14  ;;  %v257_v46 = vadd.f32 %v255_v31, %v245_v37  ;;  %v258_v52 = vadd.f32 %v256_v32, %v246_v44  ;;  %v304_v0 = vmul.f32 %v556_v55, %v302_v49  ;;  %v327_v9 = vmul.f32 %v561_v63, %v559_v1 }
  0x19   : > { %590 = vmatprep.subr.mxu0 %v332_v36  ;;  %v315_v4 = vmul.f32 %v557_v58, %v314_v56  ;;  %v316_v5 = vmul.f32 %v558_v62, %v314_v56  ;;  %v328_v10 = vmul.f32 %v561_v63, %v560_v6 }
  0x1a   : > { %591 = vmatpush3.msra.mxu0 %v332_v36  ;;  %v269_v53 = vadd.f32 %v267_v38, %v257_v46  ;;  %v270_v59 = vadd.f32 %v268_v42, %v258_v52 }
  0x1b   : > { %592 = vmatprep.subr.mxu0 %v331_v45 }
  0x1c   : > { %593 = vmatpush3.msra.mxu0 %v331_v45  ;;  %v281_v60 = vadd.f32 %v279_v47, %v269_v53  ;;  %v282_v2 = vadd.f32 %v280_v50, %v270_v59 }
  0x1e   : > { %v293_v3 = vadd.f32 %v291_v54, %v281_v60  ;;  %v294_v7 = vadd.f32 %v292_v57, %v282_v2 }
  0x20   : > { %v305_v8 = vadd.f32 %v303_v61, %v293_v3  ;;  %v306_v11 = vadd.f32 %v304_v0, %v294_v7 }
  0x22   : > { %v317_v12 = vadd.f32 %v315_v4, %v305_v8  ;;  %v318_v13 = vadd.f32 %v316_v5, %v306_v11 }
  0x24   : > { %v329_v14 = vadd.f32 %v327_v9, %v317_v12  ;;  %v330_v15 = vadd.f32 %v328_v10, %v318_v13 }
  0x26   : > { %594 = vmatprep.mubr.msk.f32.mxu0 %vm346_vm0, %v329_v14 }
  0x27   : > { %595 = vmatmul.mubr.msk.f32.vlgmr.msra.gmra.mxu0 %vm346_vm0, %v330_v15 }
  0xe7   : > { %v596_v17 = vpop.f32.mrf.mxu0 }
  0xe8   : > { %v425_v18 = vadd.f32 %v596_v17, %v562_v16 }
  0xe9   : > { %v419_v19 = vpop.f32.mrf.mxu0 }
  0xea   : > { %429 = vst [vmem:[%s219_s26 + $0x8] sm:$0xff] %v425_v18  ;;  %v420_v20 = vadd.f32 %v562_v16, %v419_v19 }
  0xec   : > { %428 = vst [vmem:[%s219_s26] sm:$0xff] %v420_v20 }
  0xed PF: > { %s14_s17 = sadd.s32 1, %s644_s17   ;;  %s786_s15 = smov %s640_s16 }
  0xee   : > { %p11_p5 = scmp.ge.s32.totalorder %s14_s17, 4   ;;  %s787_s16 = smov %s789_s18 }
  0xf0   :  { %13 = sbr.rel (!%p11_p5) target bundleno = 2 (0x2), region = 75 }

</bundles_post_ra>
